<compile_context>
chip_gen: v7x
topology: tpu7x:2x2x1
jax: 0.10.0
libtpu: 0.0.40
codegen_flags: <defaults>
</compile_context>

<pallas_src>
import functools

import jax
import jax.numpy as jnp
from jax.experimental import pallas as pl
from jax.experimental.pallas import tpu as pltpu

_LANE = 128
_SUBLANE = 8


def _sublane_mult(dtype):
    """Packed-sublane row multiple for a given input dtype."""
    itemsize = jnp.dtype(dtype).itemsize
    if itemsize >= 4:
        return 8
    if itemsize == 2:
        return 16
    return 32


def _loss_kernel(*refs, smoothing, head_weights, n_valid):
    """One batch-tile of the fused label-smoothing CE over all heads.

    refs = (*logits_refs, target_ref, partial_ref)
      logits_refs[k]: (TN, C) native dtype (cast to f32 in-kernel)
      target_ref:     (TN, 1) int32
      partial_ref:    (8, 128) f32 output block; this tile's weighted sum of
                      per-row losses broadcast over the whole block.
    """
    num_heads = len(head_weights)
    logits_refs = refs[:num_heads]
    target_ref = refs[num_heads]
    partial_ref = refs[num_heads + 1]

    tile_rows, c = logits_refs[0].shape
    tile_idx = pl.program_id(0)

    tgt = target_ref[...]                                             # (TN, 1)
    row = jax.lax.broadcasted_iota(jnp.int32, (tile_rows, 1), 0)
    valid = (row + tile_idx * tile_rows) < n_valid                    # (TN, 1) bool

    # Head-shared smoothing weight, built once per tile and reused by every
    # head.  Single select instead of cmp->cvt->mul->add:
    #   w = (1-s)*onehot + s/C  ==  where(col == tgt, 1-s+s/C, s/C)
    col = jax.lax.broadcasted_iota(jnp.int32, (tile_rows, c), 1)
    on_val = jnp.float32(1.0 - smoothing + smoothing / c)
    off_val = jnp.float32(smoothing / c)
    w = jnp.where(col == tgt, on_val, off_val)                        # (TN, C)

    def head_per_row(x_ref):
        x = x_ref[...].astype(jnp.float32)                            # (TN, C)
        m = jnp.max(x, axis=-1, keepdims=True)                        # (TN, 1)
        shifted = x - m                                               # (TN, C)
        lse = jnp.log(jnp.sum(jnp.exp(shifted), axis=-1, keepdims=True))
        # Merged nll + smoothing term: per_row = lse - sum(shifted * w).
        return lse - jnp.sum(shifted * w, axis=-1, keepdims=True)     # (TN, 1)

    per_row_total = jnp.zeros((tile_rows, 1), jnp.float32)
    for wgt, ref in zip(head_weights, logits_refs):
        per_row_total = per_row_total + jnp.float32(wgt) * head_per_row(ref)

    # Mask padded rows of a partial last tile (where, not multiply: padded
    # rows may contain NaN/inf garbage), then reduce this tile to a scalar.
    total = jnp.sum(jnp.where(valid, per_row_total, 0.0))

    # Lane-dense store of the scalar partial (whole (8,128) block).
    partial_ref[...] = jnp.broadcast_to(total, (_SUBLANE, _LANE)).astype(jnp.float32)


def _default_tile_rows(c, num_heads, itemsize, row_mult):
    # Budget ~32 MiB for double-buffered input tiles PLUS the f32 working set
    # the compiler must keep live in-kernel (shifted / exp(shifted) / w /
    # shifted*w ~= 4 f32 planes of (TN, C)).  With the explicit
    # vmem_limit_bytes below this keeps the big tile on v5e/v6e and stays
    # inside v7x's 64 MiB physical VMEM.
    budget_bytes = 32 * 1024 * 1024
    input_bytes_per_row = c * itemsize * num_heads * 2   # x2: double buffering
    interm_bytes_per_row = c * 4 * 4                     # ~4 f32 planes
    bytes_per_row = max(1, input_bytes_per_row + interm_bytes_per_row)
    tr = budget_bytes // bytes_per_row
    tr = max(row_mult, min(1024, tr))
    return (tr // row_mult) * row_mult


def _smoothed_ce_loss(logits_list, head_weights, target, smoothing, tile_rows=None):
    """weighted sum over heads of mean label-smoothing CE, in one pallas_call."""
    n, c = logits_list[0].shape
    for lg in logits_list:
        if lg.shape != (n, c):
            raise ValueError("all logits heads must share the same (N, C) shape")

    dtype = logits_list[0].dtype
    itemsize = jnp.dtype(dtype).itemsize
    row_mult = _sublane_mult(dtype)
    num_heads = len(logits_list)

    if tile_rows is None:
        tile_rows = _default_tile_rows(c, num_heads, itemsize, row_mult)
    tile_rows = max(row_mult, (tile_rows // row_mult) * row_mult)

    if tile_rows >= n:
        if n >= 2 * row_mult:
            # Guarantee >= 2 grid steps so v7x's two TensorCores both get work.
            tile_rows = max(row_mult, ((n // 2) // row_mult) * row_mult)
        else:
            tile_rows = n   # single full-N tile (block == full array dim: legal)
    grid = pl.cdiv(n, tile_rows)

    target_2d = target.astype(jnp.int32).reshape(n, 1)

    kernel = functools.partial(
        _loss_kernel,
        smoothing=float(smoothing),
        head_weights=tuple(float(w) for w in head_weights),
        n_valid=n,
    )

    in_specs = [pl.BlockSpec((tile_rows, c), lambda i: (i, 0))
                for _ in logits_list]
    in_specs.append(pl.BlockSpec((tile_rows, 1), lambda i: (i, 0)))

    # Explicit VMEM limit: estimated usage (double-buffered inputs + f32
    # intermediates + tiny target/output) with 25% headroom, capped at 48 MiB
    # so it is safe on v7x (64 MiB physical) and well above v5e's 16 MiB
    # default scoped limit.
    est_bytes = (num_heads * 2 * tile_rows * c * itemsize   # input tiles (x2 buf)
                 + 4 * tile_rows * c * 4                    # f32 intermediates
                 + 2 * tile_rows * 4                        # target tiles
                 + 2 * _SUBLANE * _LANE * 4)                # output blocks
    vmem_limit = int(min(48 * 1024 * 1024,
                         max(32 * 1024 * 1024, est_bytes * 5 // 4)))

    partials = pl.pallas_call(
        kernel,
        out_shape=jax.ShapeDtypeStruct((_SUBLANE, _LANE * grid), jnp.float32),
        grid=(grid,),
        in_specs=in_specs,
        out_specs=pl.BlockSpec((_SUBLANE, _LANE), lambda i: (0, i)),
        compiler_params=pltpu.CompilerParams(
            dimension_semantics=("parallel",),
            vmem_limit_bytes=vmem_limit),
    )(*logits_list, target_2d)

    # Each tile's partial fills its (8, 128) block; grab one lane per block,
    # reduce the handful of tiles, and fold 1/N in as a static constant.
    return jnp.sum(partials[0, ::_LANE]) * (1.0 / n)


def inception_v3_loss(inputs, target, smoothing=0.1, tile_rows=None):
    """Forward pass of `incetionV3_loss`.

    inputs: tuple (out_logits, avg_logits) or a single (N, C) logits array.
            Feed logits in their native dtype (bf16 stays bf16: the kernel
            casts to f32 on the VPU; halving HBM bytes is the biggest win on
            v5e/v6e where this kernel is HBM-bound).
    target: (N,) int class indices.
    """
    if isinstance(inputs, tuple):
        out, avg = inputs
        # Both heads fused into one kernel launch; 0.4 aux weight applied in-kernel.
        return _smoothed_ce_loss([out, avg], (1.0, 0.4), target, smoothing, tile_rows)
    return _smoothed_ce_loss([inputs], (1.0,), target, smoothing, tile_rows)


def _reference_loss(inputs, target, smoothing=0.1):
    """Pure-JAX reference for validation."""
    def ce(x, t):
        lp = jax.nn.log_softmax(x.astype(jnp.float32), axis=-1)
        nll = -jnp.take_along_axis(lp, t[:, None].astype(jnp.int32), axis=-1)[:, 0]
        smooth = -jnp.mean(lp, axis=-1)
        return jnp.mean((1.0 - smoothing) * nll + smoothing * smooth)
    if isinstance(inputs, tuple):
        out, avg = inputs
        return ce(out, target) + ce(avg, target) * 0.4
    return ce(inputs, target)


if __name__ == "__main__":
    # Small shapes consistent with InceptionV3 heads: (N, 1000) logits.
    # N=12 + tile_rows=8 exercises the multi-step grid AND the masked partial
    # last tile; C=1000 exercises the non-multiple-of-128 class axis.
    N, C = 12, 1000
    smoothing = 0.1

    key = jax.random.PRNGKey(0)
    k_out, k_avg, k_tgt = jax.random.split(key, 3)
    out_logits = jax.random.normal(k_out, (N, C), dtype=jnp.float32)
    avg_logits = jax.random.normal(k_avg, (N, C), dtype=jnp.float32)
    target = jax.random.randint(k_tgt, (N,), 0, C, dtype=jnp.int32)

    # Tuple path: main head + 0.4 * aux head (single fused kernel), forced
    # multi-tile grid with a masked partial last tile.
    loss_tuple = inception_v3_loss((out_logits, avg_logits), target, smoothing,
                                   tile_rows=8)
    # Single-tensor path with default (auto) tiling.
    loss_single = inception_v3_loss(out_logits, target, smoothing)
    # Native-bf16 path (exercises dtype-aware tile rounding + in-kernel cast).
    out_bf16 = out_logits.astype(jnp.bfloat16)
    avg_bf16 = avg_logits.astype(jnp.bfloat16)
    loss_bf16 = inception_v3_loss((out_bf16, avg_bf16), target, smoothing)

    loss_tuple = jax.block_until_ready(loss_tuple)
    loss_single = jax.block_until_ready(loss_single)
    loss_bf16 = jax.block_until_ready(loss_bf16)

    ref_tuple = _reference_loss((out_logits, avg_logits), target, smoothing)
    ref_single = _reference_loss(out_logits, target, smoothing)
    ref_bf16 = _reference_loss((out_bf16, avg_bf16), target, smoothing)

    assert jnp.allclose(loss_tuple, ref_tuple, atol=1e-5, rtol=1e-5), (
        loss_tuple, ref_tuple)
    assert jnp.allclose(loss_single, ref_single, atol=1e-5, rtol=1e-5), (
        loss_single, ref_single)
    assert jnp.allclose(loss_bf16, ref_bf16, atol=1e-4, rtol=1e-4), (
        loss_bf16, ref_bf16)

    print("KERNEL_OK")
</pallas_src>

<mosaic_0001>
module attributes {stable_mosaic.version = 11 : i64} {
  func.func @_loss_kernel(%arg0: i32, %arg1: memref<8x1000xf32, #tpu.memory_space<vmem>>, %arg2: memref<8x1000xf32, #tpu.memory_space<vmem>>, %arg3: memref<8x1xi32, #tpu.memory_space<vmem>>, %arg4: memref<8x128xf32, #tpu.memory_space<vmem>>) attributes {dimension_semantics = [#tpu.dimension_semantics<parallel>], iteration_bounds = array<i64: 2>, scalar_prefetch = 0 : i64, scratch_operands = 0 : i64, tpu.core_type = #tpu.core_type<tc>, window_params = [{transform_indices = @transform_0, window_bounds = array<i64: 8, 1000>}, {transform_indices = @transform_1, window_bounds = array<i64: 8, 1000>}, {transform_indices = @transform_2, window_bounds = array<i64: 8, 1>}, {transform_indices = @transform_3, window_bounds = array<i64: 8, 128>}]} {
    %c0 = arith.constant 0 : index
    %c0_0 = arith.constant 0 : index
    %0 = vector.load %arg3[%c0, %c0_0] : memref<8x1xi32, #tpu.memory_space<vmem>>, vector<8x1xi32>
    %1 = tpu.iota {dimensions = array<i32: 0>} : vector<8x1xi32>
    %c8_i32 = arith.constant 8 : i32
    %2 = arith.muli %arg0, %c8_i32 : i32
    %3 = vector.broadcast %2 : i32 to vector<8x1xi32>
    %4 = arith.addi %1, %3 : vector<8x1xi32>
    %c12_i32 = arith.constant 12 : i32
    %5 = vector.broadcast %c12_i32 : i32 to vector<8x1xi32>
    %6 = arith.cmpi slt, %4, %5 : vector<8x1xi32>
    %7 = tpu.iota {dimensions = array<i32: 1>} : vector<8x1000xi32>
    %8 = vector.broadcast %0 : vector<8x1xi32> to vector<8x1000xi32>
    %9 = arith.cmpi eq, %7, %8 : vector<8x1000xi32>
    %cst = arith.constant 9.001000e-01 : f32
    %cst_1 = arith.constant 9.99999974E-5 : f32
    %10 = vector.broadcast %cst : f32 to vector<8x1000xf32>
    %11 = vector.broadcast %cst_1 : f32 to vector<8x1000xf32>
    %12 = arith.select %9, %10, %11 : vector<8x1000xi1>, vector<8x1000xf32>
    %cst_2 = arith.constant 0.000000e+00 : f32
    %13 = vector.broadcast %cst_2 : f32 to vector<8x1xf32>
    %c0_3 = arith.constant 0 : index
    %c0_4 = arith.constant 0 : index
    %14 = vector.load %arg1[%c0_3, %c0_4] : memref<8x1000xf32, #tpu.memory_space<vmem>>, vector<8x1000xf32>
    %cst_5 = arith.constant dense<0xFF800000> : vector<8xf32>
    %15 = vector.multi_reduction <maximumf>, %14, %cst_5 [1] : vector<8x1000xf32> to vector<8xf32>
    %16 = vector.shape_cast %15 : vector<8xf32> to vector<8x1xf32>
    %17 = vector.broadcast %16 : vector<8x1xf32> to vector<8x1000xf32>
    %18 = arith.subf %14, %17 : vector<8x1000xf32>
    %19 = math.exp %18 : vector<8x1000xf32>
    %cst_6 = arith.constant dense<0.000000e+00> : vector<8xf32>
    %20 = vector.multi_reduction <add>, %19, %cst_6 [1] : vector<8x1000xf32> to vector<8xf32>
    %21 = vector.shape_cast %20 : vector<8xf32> to vector<8x1xf32>
    %22 = math.log %21 : vector<8x1xf32>
    %23 = arith.mulf %18, %12 : vector<8x1000xf32>
    %cst_7 = arith.constant dense<0.000000e+00> : vector<8xf32>
    %24 = vector.multi_reduction <add>, %23, %cst_7 [1] : vector<8x1000xf32> to vector<8xf32>
    %25 = vector.shape_cast %24 : vector<8xf32> to vector<8x1xf32>
    %26 = arith.subf %22, %25 : vector<8x1xf32>
    %cst_8 = arith.constant 1.000000e+00 : f32
    %27 = vector.broadcast %cst_8 : f32 to vector<8x1xf32>
    %28 = arith.mulf %27, %26 : vector<8x1xf32>
    %29 = arith.addf %13, %28 : vector<8x1xf32>
    %c0_9 = arith.constant 0 : index
    %c0_10 = arith.constant 0 : index
    %30 = vector.load %arg2[%c0_9, %c0_10] : memref<8x1000xf32, #tpu.memory_space<vmem>>, vector<8x1000xf32>
    %cst_11 = arith.constant dense<0xFF800000> : vector<8xf32>
    %31 = vector.multi_reduction <maximumf>, %30, %cst_11 [1] : vector<8x1000xf32> to vector<8xf32>
    %32 = vector.shape_cast %31 : vector<8xf32> to vector<8x1xf32>
    %33 = vector.broadcast %32 : vector<8x1xf32> to vector<8x1000xf32>
    %34 = arith.subf %30, %33 : vector<8x1000xf32>
    %35 = math.exp %34 : vector<8x1000xf32>
    %cst_12 = arith.constant dense<0.000000e+00> : vector<8xf32>
    %36 = vector.multi_reduction <add>, %35, %cst_12 [1] : vector<8x1000xf32> to vector<8xf32>
    %37 = vector.shape_cast %36 : vector<8xf32> to vector<8x1xf32>
    %38 = math.log %37 : vector<8x1xf32>
    %39 = arith.mulf %34, %12 : vector<8x1000xf32>
    %cst_13 = arith.constant dense<0.000000e+00> : vector<8xf32>
    %40 = vector.multi_reduction <add>, %39, %cst_13 [1] : vector<8x1000xf32> to vector<8xf32>
    %41 = vector.shape_cast %40 : vector<8xf32> to vector<8x1xf32>
    %42 = arith.subf %38, %41 : vector<8x1xf32>
    %cst_14 = arith.constant 4.000000e-01 : f32
    %43 = vector.broadcast %cst_14 : f32 to vector<8x1xf32>
    %44 = arith.mulf %43, %42 : vector<8x1xf32>
    %45 = arith.addf %29, %44 : vector<8x1xf32>
    %cst_15 = arith.constant 0.000000e+00 : f32
    %46 = vector.broadcast %cst_15 : f32 to vector<8x1xf32>
    %47 = arith.select %6, %45, %46 : vector<8x1xi1>, vector<8x1xf32>
    %48 = vector.shape_cast %47 : vector<8x1xf32> to vector<1x8x1xf32>
    %cst_16 = arith.constant dense<0.000000e+00> : vector<1xf32>
    %49 = vector.multi_reduction <add>, %48, %cst_16 [1, 2] : vector<1x8x1xf32> to vector<1xf32>
    %50 = vector.shape_cast %49 : vector<1xf32> to vector<1x1x1xf32>
    %51 = vector.extract %50[0, 0, 0] : f32 from vector<1x1x1xf32>
    %52 = vector.broadcast %51 : f32 to vector<8x128xf32>
    %c0_17 = arith.constant 0 : index
    %c0_18 = arith.constant 0 : index
    %53 = vector.load %arg4[%c0_17, %c0_18] : memref<8x128xf32, #tpu.memory_space<vmem>>, vector<8x128xf32>
    tpu.vector_store %arg4[%c0_17, %c0_18], %52 {strides = array<i32>} : memref<8x128xf32, #tpu.memory_space<vmem>>, vector<8x128xf32>,
    return
  }
  func.func @transform_0(%arg0: i32) -> (i32, i32) {
    %c0_i32 = arith.constant 0 : i32
    %c0_i32_0 = arith.constant 0 : i32
    return %arg0, %c0_i32 : i32, i32
  }
  func.func @transform_1(%arg0: i32) -> (i32, i32) {
    %c0_i32 = arith.constant 0 : i32
    %c0_i32_0 = arith.constant 0 : i32
    return %arg0, %c0_i32 : i32, i32
  }
  func.func @transform_2(%arg0: i32) -> (i32, i32) {
    %c0_i32 = arith.constant 0 : i32
    %c0_i32_0 = arith.constant 0 : i32
    return %arg0, %c0_i32 : i32, i32
  }
  func.func @transform_3(%arg0: i32) -> (i32, i32) {
    %c0_i32 = arith.constant 0 : i32
    %c0_i32_0 = arith.constant 0 : i32
    return %c0_i32, %arg0 : i32, i32
  }
}

</mosaic_0001>

<bundles_post_ra>
// kernel: tpu_custom_call.1
= control target key start
LH: loop header
LB: loop body
LE: loop exit
PB: predicated region body
PF: predicated region fallthrough
CT: control target
= control target key end

     0   :  { %8 = vsyncpa [#allocation3], 0  ;;  %s1157_s0 = inlined_call_operand.hbm [shape: f32[12,1000], index: 0, kind: input, shape index: {}]   ;;  %s1158_s1 = inlined_call_operand.hbm [shape: f32[12,1000], index: 1, kind: input, shape index: {}]   ;;  %s1159_s2 = inlined_call_operand.vmem [shape: s32[12,1], index: 2, kind: input, shape index: {}]   ;;  %s1160_s3 = inlined_call_operand.hbm [shape: f32[8,256], index: 3, kind: output, shape index: {}]  }
   0x1   :  { %10 = vsyncpa [#allocation3 + $0x1], 0 }
   0x2   :  { %11 = vsyncpa [#allocation6], 0 }
   0x3   :  { %13 = vsyncpa [#allocation6 + $0x1], 0 }
   0x4   :  { %14 = vsyncpa [#allocation4], 0 }
   0x5   :  { %16 = vsyncpa [#allocation4 + $0x1], 0  ;;  %s831_s12 = smov 0   ;;  %s833_s13 = smov 0  }
   0x6   :  { %s835_s14 = smov 0   ;;  %s837_s15 = smov 0  }
   0x7 LB: > { %s852_s16 = sadd.s32 4294967295, %s804_s15   ;;  %s560_s17 = sadd.s32 4294967294, %s804_s15   ;;  %s804_s15 = sphi %s837_s15, %s1179_s15   ;;  %s800_s14 = sphi %s835_s14, %s1178_s14   ;;  %s796_s13 = sphi %s833_s13, %s1177_s13   ;;  %s792_s12 = sphi %s831_s12, %s1176_s12  }
   0x8   : > { %s856_s18 = sadd.s32 1, %s804_s15   ;;  %s29_s19 = sadd.s32 1, %s800_s14 }
   0x9   : > { %s26_s20 = ssub.s32 %s804_s15, %s856_s18  ;;  %p36_p0 = scmp.ne.s32.totalorder %s800_s14, %s796_s13 }
   0xa   : > { %p27_p1 = scmp.eq.s32.totalorder %s26_s20, 0  ;;  %p37_p2 = scmp.eq.s32.totalorder %s804_s15, 0 }
   0xb   : > { %p42_p3 = scmp.ne.s32.totalorder %s796_s13, %s792_s12  ;;  %p43_p4 = scmp.eq.s32.totalorder %s852_s16, 0 }
   0xc   : > { %s868_s21 = scalar_select %p27_p1, %s800_s14, %s29_s19  }
   0xd   : > { %p870_p5 = por %p37_p2, %p36_p0  ;;  %p874_p6 = por %p43_p4, %p42_p3 }
   0xe   : > { %p118_p7 = scmp.eq.s32.totalorder %s852_s16, 1  ;;  %p124_p8 = scmp.eq.s32.totalorder %s560_s17, 1 }
   0xf   : > { %s1164_s23 = scalar_select %p874_p6, 1, 0 }
  0x10   : > { %p600_p10 = scmp.lt.s32.totalorder %s804_s15, 2  ;;  %p881_p11 = por %p118_p7, %p36_p0 }
  0x11   : > { %p885_p12 = por %p124_p8, %p42_p3  ;;  %s890_s26 = sand.u32 1, %s800_s14  }
  0x12   : > { %s1165_s24 = scalar_select %p881_p11, 1, 0 }
  0x13   : > { %s1166_s25 = scalar_select %p885_p12, 1, 0 }
  0x14   : > { %s579_s27 = sshll.u32 %s804_s15, 10  ;;  %s563_s28 = sshll.u32 %s890_s26, 6 }
  0x15   : > { %s899_s4 = scalar_lea.hbm %s1157_s0, %s579_s27  ;;  %s148_s5 = scalar_lea.vmem [#allocation2], %s563_s28 }
  0x16   : > { %s156_s6 = sshll.u32 %s148_s5, 4  ;;  %p905_p13 = pnand %p600_p10, %p870_p5  ;;  %s909_s6 = int_to_ptr.vmem [resolvable:$true] %s156_s6 }
  0x17   : > { %s145_s8 = scalar_lea.sflag [#allocation3], %s890_s26  ;;  %s674_s9 = scalar_lea.hbm %s899_s4, 1024 }
  0x18   : > { %p675_p2 = scmp.ne.s32.totalorder %s899_s4, %s674_s9  ;;  %p676_p3 = pneg %p905_p13 }
  0x19   : > { %s679_s17 = scalar_lea.hbm %s1157_s0, 2048  ;;  %p680_p5 = scmp.lt.u32.totalorder %s899_s4, %s1157_s0 }
  0x1a   : > { %p677_p4 = pnand %p676_p3, %p675_p2  ;;  %p681_p8 = scmp.lt.u32.totalorder %s679_s17, %s674_s9 }
  0x1b   : > { %p683_p9 = scmp.lt.u32.totalorder %s674_s9, %s899_s4 }
  0x1c   : > { %p678_p7 = pneg %p677_p4  ;;  %p682_p10 = por %p681_p8, %p680_p5 }
  0x1e   : > { %p684_p0 = por %p683_p9, %p682_p10 }
  0x20   : > { %p685_p1 = pnand %p684_p0, %p678_p7 }
  0x22   : > { %688 = shalt.err (!%p685_p1)
}
  0x23   : > { %s689_s22 = scalar_lea.vmem %s909_s6, 1024  ;;  %s806_s29 = smov [#allocation2]  }
  0x24   : > { %p690_p2 = scmp.ne.s32.totalorder %s909_s6, %s689_s22  ;;  %s694_s30 = sshll.u32 %s806_s29, 4  ;;  %s695_s30 = int_to_ptr.vmem [resolvable:$false] %s694_s30 }
  0x25   : > { %s696_s5 = scalar_lea.vmem %s695_s30, 2048  ;;  %p697_p11 = scmp.lt.s32.totalorder %s909_s6, %s695_s30 }
  0x26   : > { %p692_p4 = pnand %p690_p2, %p676_p3  ;;  %p698_p5 = scmp.lt.s32.totalorder %s696_s5, %s689_s22 }
  0x28   : > { %p693_p12 = pneg %p692_p4  ;;  %p699_p8 = por %p698_p5, %p697_p11 }
  0x2a   : > { %p700_p9 = pnand %p699_p8, %p693_p12 }
  0x2c   : > { %703 = shalt.err (!%p700_p9)
}
  0x2d   : > { %592 = dma.hbm_to_vmem [thread:$0]  (!%p905_p13), %s899_s4, 1024, %s909_s6, %s145_s8  }
  0x2e   : > { %p1168_p0 = scmp.lt.s32.totalorder %s804_s15, 3  ;;  %p1169_p1 = scmp.ge.s32.totalorder %s804_s15, 1 }
  0x2f   : > { %s952_s17 = scalar_lea.hbm %s1158_s1, %s579_s27  ;;  %s167_s19 = scalar_lea.vmem [#allocation5], %s563_s28 }
  0x30   : > { %p943_p7 = pnand %p1169_p1, %p1168_p0  ;;  %s175_s20 = sshll.u32 %s167_s19, 4  ;;  %s176_s20 = int_to_ptr.vmem [resolvable:$true] %s175_s20 }
  0x31   : > { %s164_s4 = scalar_lea.sflag [#allocation6], %s890_s26  ;;  %s704_s6 = scalar_lea.hbm %s952_s17, 1024 }
  0x32   : > { %s1170_s9 = scalar_select %p943_p7, 1, 0 }
  0x33   : > { %p705_p11 = scmp.ne.s32.totalorder %s952_s17, %s704_s6  ;;  %s709_s27 = scalar_lea.hbm %s1158_s1, 2048 }
  0x34   : > { %p710_p2 = scmp.lt.u32.totalorder %s952_s17, %s1158_s1  ;;  %p711_p4 = scmp.lt.u32.totalorder %s709_s27, %s704_s6 }
  0x35   : > { %p707_p12 = pnand %p705_p11, %p676_p3  ;;  %p713_p8 = scmp.lt.u32.totalorder %s704_s6, %s952_s17 }
  0x36   : > { %p712_p5 = por %p711_p4, %p710_p2 }
  0x37   : > { %p708_p10 = pneg %p707_p12 }
  0x38   : > { %p714_p9 = por %p713_p8, %p712_p5 }
  0x3a   : > { %p715_p0 = pnand %p714_p9, %p708_p10 }
  0x3c   : > { %718 = shalt.err (!%p715_p0)
}
  0x3d   : > { %s719_s26 = scalar_lea.vmem %s176_s20, 1024  ;;  %s807_s28 = smov [#allocation5]  }
  0x3e   : > { %p720_p1 = scmp.ne.s32.totalorder %s176_s20, %s719_s26  ;;  %s724_s5 = sshll.u32 %s807_s28, 4  ;;  %s725_s5 = int_to_ptr.vmem [resolvable:$false] %s724_s5 }
  0x3f   : > { %s726_s10 = scalar_lea.vmem %s725_s5, 2048  ;;  %p727_p6 = scmp.lt.s32.totalorder %s176_s20, %s725_s5 }
  0x40   : > { %p722_p11 = pnand %p720_p1, %p676_p3  ;;  %p728_p7 = scmp.lt.s32.totalorder %s726_s10, %s719_s26 }
  0x42   : > { %p723_p12 = pneg %p722_p11  ;;  %p729_p2 = por %p728_p7, %p727_p6 }
  0x44   : > { %p730_p4 = pnand %p729_p2, %p723_p12 }
  0x46   : > { %733 = shalt.err (!%p730_p4)
}
  0x47   : > { %595 = dma.hbm_to_vmem [thread:$0]  (!%p905_p13), %s952_s17, 1024, %s176_s20, %s164_s4  }
  0x48   : > { %p1171_p10 = scmp.ne.s32.totalorder %s1170_s9, 0 }
  0x49   : > { %s979_s11 = sand.u32 (!%p1171_p10), 1, %s796_s13   ;;  %p1172_p6 = scmp.ne.s32.totalorder (!%p1171_p10), %s1164_s23, 0 }
  0x4a   : > { %191 = sbr.rel (%p1171_p10) target bundleno = 652 (0x28c), region = 32  ;;  %s570_s19 = sshll.u32 (!%p1171_p10), %s979_s11, 6 }
  0x4b   : > { %s194_s6 = scalar_lea.sflag (!%p1171_p10), [#allocation3], %s979_s11  ;;  %s983_s8 = scalar_lea.vmem (!%p1171_p10), [#allocation2], %s570_s19 }
  0x51   : > { %779 = dma.done.wait (%p1172_p6), %s194_s6, 1024  }
  0x52   : > { %781 = vsyncadd (%p1172_p6), %s194_s6, 4294966272  ;;  %s203_s7 = scalar_lea.sflag [#allocation6], %s979_s11  ;;  %s206_s9 = scalar_lea.vmem [#allocation5], %s570_s19 }
  0x53   : > { %783 = dma.done.wait (%p1172_p6), %s203_s7, 1024  }
  0x54   : > { %785 = vsyncadd (%p1172_p6), %s203_s7, 4294966272  ;;  %p238_p13 = scmp.lt.s32.totalorder %s852_s16, 1  ;;  %v808_v0 = vmov 0   ;;  %vm288_vm0 = vcmask 850944   ;;  %v352_v1 = vld [vmem:[%s206_s9] sm:$0xff]  ;;  %v353_v2 = vld [vmem:[%s206_s9 + $0x8] sm:$0xff]  ;;  %v243_v34 = vlaneseq }
  0x55   : > { %636 = vset.pattern.permute.xlu1 %v808_v0  ;;  %637 = vset.pattern.permute.xlu0 %v808_v0  ;;  %v354_v3 = vld [vmem:[%s206_s9 + $0x10] sm:$0xff]  ;;  %v355_v4 = vld [vmem:[%s206_s9 + $0x18] sm:$0xff]  ;;  %v356_v5 = vld [vmem:[%s206_s9 + $0x20] sm:$0xff]  ;;  %v809_v56 = vmov 0.0001   ;;  %s574_s27 = sshll.u32 %s852_s16, 3 }
  0x56   : > { %s239_s17 = scalar_select %p238_p13, %s852_s16, 1  ;;  %v357_v6 = vld [vmem:[%s206_s9 + $0x28] sm:$0xff]  ;;  %v358_v7 = vld [vmem:[%s206_s9 + $0x30] sm:$0xff]  ;;  %v359_v8 = vld [vmem:[%s206_s9 + $0x38] sm:$0xff]  ;;  %v360_v9 = vmax.f32 %v352_v1, %v356_v5  ;;  %v1019_v35 = vand.u32 127, %v243_v34  ;;  %vm428_vm10 = vcmask 7168  }
  0x57   : > { %v361_v10 = vmax.f32 %v353_v2, %v357_v6  ;;  %v277_v11 = vld [vmem:[%s983_s8] sm:$0xff]  ;;  %v362_v12 = vmax.f32 %v354_v3, %v358_v7  ;;  %v363_v13 = vsel %vm288_vm0, %v359_v8, -inf  ;;  %v278_v14 = vld [vmem:[%s983_s8 + $0x8] sm:$0xff]  ;;  %v279_v15 = vld [vmem:[%s983_s8 + $0x10] sm:$0xff]  ;;  %s572_s29 = sshll.u32 %s979_s11, 3  ;;  %s576_s28 = sshll.u32 %s852_s16, 7 }
  0x58   : > { %s573_s20 = sshll.u32 %s239_s17, 3  ;;  %v280_v16 = vld [vmem:[%s983_s8 + $0x18] sm:$0xff]  ;;  %v364_v17 = vmax.f32 %v355_v4, %v363_v13  ;;  %v281_v19 = vld [vmem:[%s983_s8 + $0x20] sm:$0xff]  ;;  %v1006_v20 = vld [vmem:[%s983_s8 + $0x28] sm:$0xff]  ;;  %v251_v38 = vadd.s32 128, %v1019_v35  ;;  %v252_v43 = vadd.s32 256, %v1019_v35  ;;  %s1115_s6 = scalar_lea.hbm %s1160_s3, %s576_s28 }
  0x59   : > { %s241_s22 = scalar_lea.vmem %s1159_s2, %s573_s20  ;;  %v365_v18 = vmax.f32 %v360_v9, %v361_v10  ;;  %v1009_v21 = vld [vmem:[%s983_s8 + $0x30] sm:$0xff]  ;;  %v1012_v22 = vld [vmem:[%s983_s8 + $0x38] sm:$0xff]  ;;  %v285_v23 = vmax.f32 %v277_v11, %v281_v19  ;;  %v286_v24 = vmax.f32 %v278_v14, %v1006_v20  ;;  %v254_v10 = vadd.s32 512, %v1019_v35  ;;  %s237_s30 = scalar_lea.vmem [#allocation7], %s572_s29 }
  0x5a   : > { %v287_v25 = vmax.f32 %v279_v15, %v1009_v21  ;;  %v242_v26 = vld [vmem:[%s241_s22] sm:$0xff]  ;;  %v366_v27 = vmax.f32 %v362_v12, %v364_v17  ;;  %v289_v28 = vsel %vm288_vm0, %v1012_v22, -inf  ;;  %s455_s26 = sshll.u32 %s237_s30, 4  ;;  %s442_s8 = scalar_lea.sflag [#allocation4], %s979_s11  ;;  %s1110_s26 = int_to_ptr.vmem [resolvable:$true] %s455_s26 }
  0x5b   : > { %259 = vperm.xlu1 %636, %v242_v26   ;;  %v290_v29 = vmax.f32 %v280_v16, %v289_v28  ;;  %v291_v30 = vmax.f32 %v285_v23, %v286_v24  ;;  %s734_s7 = scalar_lea.vmem %s1110_s26, 128  ;;  %p1173_p7 = scmp.ne.s32.totalorder %s1165_s24, 0 }
  0x5c   : > { %v367_v31 = vmax.f32 %v365_v18, %v366_v27  ;;  %v255_v27 = vadd.s32 640, %v1019_v35  ;;  %p735_p3 = scmp.ne.s32.totalorder %s1110_s26, %s734_s7  ;;  %s810_s16 = smov [#allocation7]  }
  0x5d   : > { %v292_v32 = vmax.f32 %v287_v25, %v290_v29  ;;  %s738_s9 = sshll.u32 %s810_s16, 4  ;;  %s739_s9 = int_to_ptr.vmem [resolvable:$false] %s738_s9 }
  0x5e   : > { %368 = vmax.xlane.f32.xlu0 %v367_v31  ;;  %p736_p5 = pnand %p735_p3, %p1173_p7  ;;  %s740_s17 = scalar_lea.vmem %s739_s9, 256 }
  0x5f   : > { %v293_v33 = vmax.f32 %v291_v30, %v292_v32  ;;  %p741_p9 = scmp.lt.s32.totalorder %s1110_s26, %s739_s9  ;;  %p742_p0 = scmp.lt.s32.totalorder %s740_s17, %s734_s7 }
  0x60   : > { %p737_p8 = pneg %p736_p5 }
  0x61   : > { %p743_p1 = por %p742_p0, %p741_p9 }
  0x62   : > { %294 = vmax.xlane.f32.xlu0 %v293_v33 }
  0x63   : > { %p744_p11 = pnand %p743_p1, %p737_p8 }
  0xda   : > { %v1021_v37 = vpop.permute.xlu1 %259 }
  0xdb   : > { %vm261_vm1 = vcmp.eq.s32.totalorder %v1019_v35, %v1021_v37  ;;  %vm262_vm2 = vcmp.eq.s32.totalorder %v251_v38, %v1021_v37  ;;  %vm263_vm3 = vcmp.eq.s32.totalorder %v252_v43, %v1021_v37  ;;  %vm265_vm5 = vcmp.eq.s32.totalorder %v254_v10, %v1021_v37 }
  0xdc   : > { %v269_v57 = vsel %vm261_vm1, 0.9001, %v809_v56  ;;  %v270_v63 = vsel %vm262_vm2, 0.9001, %v809_v56  ;;  %v271_v13 = vsel %vm263_vm3, 0.9001, %v809_v56  ;;  %vm266_vm6 = vcmp.eq.s32.totalorder %v255_v27, %v1021_v37 }
  0xdd   : > { %v256_v43 = vadd.s32 768, %v1019_v35 }
  0xdf   : > { %vm267_vm7 = vcmp.eq.s32.totalorder %v256_v43, %v1021_v37 }
  0xe0   : > { %v275_v10 = vsel %vm267_vm7, 0.9001, %v809_v56 }
  0xeb   : > { %v369_v36 = vpop.xlane.xlu0 %368 }
  0xec   : > { %v370_v39 = vsub.f32 %v352_v1, %v369_v36  ;;  %v371_v40 = vsub.f32 %v353_v2, %v369_v36  ;;  %v1024_v41 = vsub.f32 %v354_v3, %v369_v36  ;;  %v1026_v42 = vsub.f32 %v355_v4, %v369_v36 }
  0xed   : > { %v1032_v47 = vsub.f32 %v356_v5, %v369_v36  ;;  %v1034_v49 = vsub.f32 %v357_v6, %v369_v36  ;;  %v1040_v54 = vsub.f32 %v358_v7, %v369_v36  ;;  %v1042_v55 = vsub.f32 %v359_v8, %v369_v36 }
  0xee   : > { %v378_v44 = vmul.f32 1.442695, %v370_v39  ;;  %v380_v45 = vmul.f32 1.442695, %v371_v40  ;;  %v382_v46 = vmul.f32 1.442695, %v1024_v41  ;;  %v406_v5 = vmul.f32 %v370_v39, %v269_v57 }
  0xef   : > { %v295_v48 = vpop.xlane.xlu0 %294  ;;  %v384_v50 = vmul.f32 1.442695, %v1026_v42  ;;  %v386_v62 = vmul.f32 1.442695, %v1032_v47  ;;  %v388_v0 = vmul.f32 1.442695, %v1034_v49  ;;  %v407_v6 = vmul.f32 %v371_v40, %v270_v63 }
  0xf0   : > { %638 = vpow2.f32 %v378_v44  ;;  %v296_v51 = vsub.f32 %v277_v11, %v295_v48  ;;  %v297_v52 = vsub.f32 %v278_v14, %v295_v48  ;;  %v1038_v53 = vsub.f32 %v279_v15, %v295_v48 }
  0xf1   : > { %640 = vpow2.f32 %v380_v45  ;;  %v1046_v61 = vsub.f32 %v280_v16, %v295_v48  ;;  %v253_v1 = vadd.s32 384, %v1019_v35  ;;  %v1054_v2 = vsub.f32 %v281_v19, %v295_v48 }
  0xf2   : > { %642 = vpow2.f32 %v382_v46  ;;  %v304_v58 = vmul.f32 1.442695, %v296_v51  ;;  %v306_v59 = vmul.f32 1.442695, %v297_v52  ;;  %v308_v60 = vmul.f32 1.442695, %v1038_v53 }
  0xf3   : > { %644 = vpow2.f32 %v384_v50  ;;  %v390_v3 = vmul.f32 1.442695, %v1040_v54  ;;  %v392_v4 = vmul.f32 1.442695, %v1042_v55  ;;  %v1060_v7 = vsub.f32 %v1006_v20, %v295_v48 }
  0xf4   : > { %646 = vpow2.f32 %v304_v58  ;;  %v310_v8 = vmul.f32 1.442695, %v1046_v61  ;;  %v1064_v9 = vsub.f32 %v1012_v22, %v295_v48  ;;  %vm264_vm4 = vcmp.eq.s32.totalorder %v253_v1, %v1021_v37 }
  0xf5   : > { %648 = vpow2.f32 %v306_v59  ;;  %v1069_v11 = vsub.f32 %v1009_v21, %v295_v48  ;;  %v312_v12 = vmul.f32 1.442695, %v1054_v2  ;;  %v414_v15 = vadd.f32 %v407_v6, %v406_v5 }
  0xf6   : > { %650 = vpow2.f32 %v308_v60  ;;  %v332_v16 = vmul.f32 %v296_v51, %v269_v57  ;;  %v333_v17 = vmul.f32 %v297_v52, %v270_v63  ;;  %v314_v19 = vmul.f32 1.442695, %v1060_v7 }
  0xf7   : > { %652 = vpow2.f32 %v386_v62  ;;  %v318_v23 = vmul.f32 1.442695, %v1064_v9  ;;  %v272_v21 = vsel %vm264_vm4, 0.9001, %v809_v56  ;;  %v408_v24 = vmul.f32 %v1024_v41, %v271_v13 }
  0xf8   : > { %654 = vpow2.f32 %v388_v0  ;;  %v316_v26 = vmul.f32 1.442695, %v1069_v11  ;;  %v340_v31 = vadd.f32 %v333_v17, %v332_v16  ;;  %v409_v33 = vmul.f32 %v1026_v42, %v272_v21 }
  0xf9   : > { %656 = vpow2.f32 %v390_v3  ;;  %v415_v30 = vadd.f32 %v414_v15, %v408_v24  ;;  %v334_v40 = vmul.f32 %v1038_v53, %v271_v13  ;;  %v273_v44 = vsel %vm265_vm5, 0.9001, %v809_v56 }
  0xfa   : > { %v639_v14 = vpop.eup %638  ;;  %658 = vpow2.f32 %v392_v4  ;;  %v257_v52 = vadd.s32 896, %v1019_v35  ;;  %v410_v53 = vmul.f32 %v1032_v47, %v273_v44  ;;  %v335_v59 = vmul.f32 %v1046_v61, %v272_v21 }
  0xfb   : > { %v641_v18 = vpop.eup %640  ;;  %660 = vpow2.f32 %v310_v8  ;;  %v416_v50 = vadd.f32 %v415_v30, %v409_v33  ;;  %v341_v51 = vadd.f32 %v340_v31, %v334_v40  ;;  %v274_v62 = vsel %vm266_vm6, 0.9001, %v809_v56 }
  0xfc   : > { %v643_v20 = vpop.eup %642  ;;  %v394_v22 = vadd.f32 %v641_v18, %v639_v14  ;;  %662 = vpow2.f32 %v312_v12  ;;  %vm268_vm8 = vcmp.eq.s32.totalorder %v257_v52, %v1021_v37  ;;  %v411_v47 = vmul.f32 %v1034_v49, %v274_v62 }
  0xfd   : > { %v645_v25 = vpop.eup %644  ;;  %664 = vpow2.f32 %v314_v19  ;;  %v417_v1 = vadd.f32 %v416_v50, %v410_v53  ;;  %v342_v3 = vadd.f32 %v341_v51, %v335_v59  ;;  %v336_v61 = vmul.f32 %v1054_v2, %v273_v44 }
  0xfe   : > { %v647_v28 = vpop.eup %646  ;;  %v395_v29 = vadd.f32 %v643_v20, %v394_v22  ;;  %666 = vpow2.f32 %v318_v23  ;;  %v276_v14 = vsel %vm268_vm8, 0.9001, %v809_v56  ;;  %v412_v37 = vmul.f32 %v1040_v54, %v275_v10 }
  0xff   : > { %v649_v32 = vpop.eup %648  ;;  %668 = vpow2.f32 %v316_v26  ;;  %v418_v15 = vadd.f32 %v417_v1, %v411_v47  ;;  %v343_v16 = vadd.f32 %v342_v3, %v336_v61  ;;  %v337_v19 = vmul.f32 %v1060_v7, %v274_v62 }
 0x100   : > { %v651_v36 = vpop.eup %650  ;;  %v396_v38 = vadd.f32 %v645_v25, %v395_v29  ;;  %v320_v39 = vadd.f32 %v649_v32, %v647_v28  ;;  %v413_v2 = vmul.f32 %v1042_v55, %v276_v14  ;;  %v338_v21 = vmul.f32 %v1069_v11, %v275_v10 }
 0x101   : > { %v653_v41 = vpop.eup %652  ;;  %v419_v22 = vadd.f32 %v418_v15, %v412_v37  ;;  %v344_v23 = vadd.f32 %v343_v16, %v337_v19  ;;  %v339_v24 = vmul.f32 %v1064_v9, %v276_v14  ;;  %v244_v11 = vshrl.u32 %v243_v34, 7 }
 0x102   : > { %v655_v45 = vpop.eup %654  ;;  %v397_v46 = vadd.f32 %v653_v41, %v396_v38  ;;  %v321_v48 = vadd.f32 %v651_v36, %v320_v39  ;;  %v420_v56 = vsel %vm288_vm0, %v413_v2, 0.0  ;;  %v246_v31 = vstv %s574_s27 }
 0x103   : > { %v657_v42 = vpop.eup %656  ;;  %v421_v25 = vadd.f32 %v420_v56, %v419_v22  ;;  %v345_v26 = vadd.f32 %v344_v23, %v338_v21  ;;  %v346_v54 = vsel %vm288_vm0, %v339_v24, 0.0  ;;  %v247_v33 = vadd.s32 %v246_v31, %v244_v11 }
 0x104   : > { %v659_v57 = vpop.eup %658  ;;  %v398_v58 = vadd.f32 %v655_v45, %v397_v46 }
 0x105   : > { %v661_v60 = vpop.eup %660  ;;  %v400_v5 = vsel %vm288_vm0, %v659_v57, 0.0  ;;  %v347_v7 = vadd.f32 %v346_v54, %v345_v26  ;;  %vm248_vm9 = vcmp.lt.s32.totalorder %v247_v33, 12 }
 0x106   : > { %v399_v63 = vadd.f32 %v657_v42, %v398_v58  ;;  %v322_v0 = vadd.f32 %v661_v60, %v321_v48  ;;  %v663_v4 = vpop.eup %662 }
 0x107   : > { %v665_v8 = vpop.eup %664 }
 0x108   : > { %v401_v35 = vadd.f32 %v400_v5, %v399_v63  ;;  %v323_v6 = vadd.f32 %v663_v4, %v322_v0  ;;  %v667_v12 = vpop.eup %666 }
 0x109   : > { %v669_v17 = vpop.eup %668  ;;  %v326_v49 = vsel %vm288_vm0, %v667_v12, 0.0 }
 0x10a   : > { %402 = vadd.xlane.f32.xlu1 %v401_v35  ;;  %v324_v13 = vadd.f32 %v665_v8, %v323_v6 }
 0x10c   : > { %v325_v18 = vadd.f32 %v669_v17, %v324_v13 }
 0x10e   : > { %v327_v20 = vadd.f32 %v326_v49, %v325_v18 }
 0x110   : > { %328 = vadd.xlane.f32.xlu0 %v327_v20 }
 0x114   : > { %422 = vadd.xlane.f32.xlu0 %v421_v25 }
 0x118   : > { %348 = vadd.xlane.f32.xlu0 %v347_v7 }
 0x197   : > { %v403_v27 = vpop.xlane.xlu1 %402 }
 0x198   : > { %670 = vlog2.f32 %v403_v27 }
 0x19d   : > { %v329_v55 = vpop.xlane.xlu0 %328 }
 0x19e   : > { %672 = vlog2.f32 %v329_v55 }
 0x1a1   : > { %v423_v30 = vpop.xlane.xlu0 %422 }
 0x1a2   : > { %v671_v28 = vpop.eup %670 }
 0x1a3   : > { %v405_v29 = vmul.f32 0.6931472, %v671_v28 }
 0x1a5   : > { %v424_v32 = vsub.f32 %v405_v29, %v423_v30  ;;  %v349_v38 = vpop.xlane.xlu0 %348 }
 0x1a7   : > { %v425_v39 = vmul.f32 0.4, %v424_v32 }
 0x1a8   : > { %v673_v9 = vpop.eup %672 }
 0x1a9   : > { %v331_v36 = vmul.f32 0.6931472, %v673_v9 }
 0x1ab   : > { %v350_v40 = vsub.f32 %v331_v36, %v349_v38 }
 0x1ad   : > { %v426_v41 = vadd.f32 %v425_v39, %v350_v40 }
 0x1af   : > { %v427_v43 = vsel %vm248_vm9, %v426_v41, 0.0 }
 0x1b0   : > { %v429_v44 = vsel %vm428_vm10, %v427_v43, 0.0 }
 0x1b1   : > { %430 = vadd.xlane.f32.xlu0 %v429_v44 }
 0x23e   : > { %v431_v45 = vpop.xlane.xlu0 %430 }
 0x23f   : > { %v432_v46 = vrot.slane %v431_v45, 4 }
 0x241   : > { %v433_v34 = vadd.f32 %v432_v46, %v431_v45 }
 0x243   : > { %v434_v48 = vrot.slane %v433_v34, 2 }
 0x245   : > { %v435_v50 = vadd.f32 %v434_v48, %v433_v34 }
 0x247   : > { %v436_v51 = vrot.slane %v435_v50, 1 }
 0x249   : > { %v437_v42 = vadd.f32 %v436_v51, %v435_v50 }
 0x24b   : > { %581 = vpush %v437_v42 }
 0x27c   : > { %s582_s5 = spop %581 }
 0x27d   : > { %v439_v52 = vstv %s582_s5 }
 0x27e   : > { %440 = vst [vmem:[%s237_s30] sm:$0xff] %v439_v52 }
 0x27f   : > { %747 = shalt.err (!%p744_p11)
}
 0x280   : > { %s748_s11 = scalar_lea.hbm %s1115_s6, 128  ;;  %s752_s4 = scalar_lea.hbm %s1160_s3, 256 }
 0x281   : > { %p749_p12 = scmp.ne.s32.totalorder %s1115_s6, %s748_s11  ;;  %p753_p10 = scmp.lt.u32.totalorder %s1115_s6, %s1160_s3 }
 0x282   : > { %p754_p6 = scmp.lt.u32.totalorder %s752_s4, %s748_s11  ;;  %p756_p3 = scmp.lt.u32.totalorder %s748_s11, %s1115_s6 }
 0x283   : > { %p750_p2 = pnand %p749_p12, %p1173_p7 }
 0x284   : > { %p755_p13 = por %p754_p6, %p753_p10 }
 0x285   : > { %p751_p4 = pneg %p750_p2 }
 0x286   : > { %p757_p5 = por %p756_p3, %p755_p13 }
 0x288   : > { %p758_p8 = pnand %p757_p5, %p751_p4 }
 0x28a   : > { %761 = shalt.err (!%p758_p8)
}
 0x28b   : > { %587 = dma.vmem_to_hbm [thread:$0]  (%p1173_p7), %s1110_s26, 128, %s1115_s6, %s442_s8  }
 0x28c PF: > { %s467_s29 = sand.u32 1, %s792_s12   ;;  %p1174_p9 = scmp.ne.s32.totalorder %s1166_s25, 0 }
 0x28d   : > { %p1175_p0 = scmp.ge.s32.totalorder %s804_s15, 2  ;;  %s468_s30 = scalar_lea.sflag [#allocation4], %s467_s29 }
 0x28f   : > { %p597_p1 = pnand %p1175_p0, %p1174_p9 }
 0x291   : > { %787 = dma.done.wait (!%p597_p1), %s468_s30, 128  }
 0x292   : > { %789 = vsyncadd (!%p597_p1), %s468_s30, 4294967168  ;;  %p19_p11 = scmp.ge.s32.totalorder %s856_s18, 4   ;;  %s1176_s12 = smov %s796_s13 }
 0x293   : > { %s1177_s13 = smov %s800_s14  ;;  %s1178_s14 = smov %s868_s21 }
 0x294   : > { %s1179_s15 = smov %s856_s18  ;;  %21 = sbr.rel (!%p19_p11) target bundleno = 7 (0x7), region = 93 }
 0x29b   :  { %473 = vsyncpa [#allocation3], 1 }
 0x29c   :  { %475 = vsyncpa [#allocation3 + $0x1], 1 }
 0x29d   :  { %476 = vsyncpa [#allocation6], 1 }
 0x29e   :  { %478 = vsyncpa [#allocation6 + $0x1], 1 }
 0x29f   :  { %479 = vsyncpa [#allocation4], 1 }
 0x2a0   :  { %481 = vsyncpa [#allocation4 + $0x1], 1 }

</bundles_post_ra>
